<compile_context>
chip_gen: v6e
topology: v6e:2x2x1
jax: 0.10.0
libtpu: 0.0.40
codegen_flags: <defaults>
</compile_context>

<pallas_src>
import jax
import jax.numpy as jnp
from jax import lax
from jax.experimental import pallas as pl
from jax.experimental.pallas import tpu as pltpu


# VMEM budgeting: conservative targets that fit every generation
# (v5e/v6e scoped defaults are 16/32 MiB; v7x physical VMEM is 64 MiB).
_VMEM_LIMIT_BYTES = 48 * 1024 * 1024     # explicit scoped-VMEM limit requested
_VMEM_BLOCK_BUDGET = 24 * 1024 * 1024    # target for double-buffered blocks


# ----------------------------------------------------------------------------
# Static (trace-time) tile pickers.
# ----------------------------------------------------------------------------
def _divisor_tiles(dim, candidates):
    tiles = [t for t in candidates if dim % t == 0]
    return tiles if tiles else [dim]


def _pick_matmul_tiles(M, K, N, x_bytes):
    """VMEM-budget-aware (TM, TN) for the tiled matmul+bias kernels."""
    tm_cands = _divisor_tiles(M, (512, 256, 128, 64, 32, 16, 8))
    tn_cands = _divisor_tiles(N, (1024, 512, 256, 128))

    def footprint(tm, tn):
        # double-buffered x, w(bf16), bias(f32) and out(f32) blocks
        return 2 * (tm * K * x_bytes + K * tn * 2 + tn * 4 + tm * tn * 4)

    best = None
    for tm in tm_cands:
        for tn in tn_cands:
            if footprint(tm, tn) > _VMEM_BLOCK_BUDGET:
                continue
            key = (tm * tn, tn)                 # prefer big, lane-dense blocks
            if best is None or key > best[0]:
                best = (key, tm, tn)
    if best is None:
        return tm_cands[-1], tn_cands[-1]
    return best[1], best[2]


def _pick_time_tile(b_blk, T, H):
    """Timesteps per recurrent grid step, bounded by the VMEM budget."""
    cands = _divisor_tiles(T, (32, 16, 8))
    for tq in cands:
        fp = (2 * (b_blk * tq * 4 * H * 4     # gx block, f32, double-buffered
                   + b_blk * tq * H * 2)      # hseq block, bf16, double-buffered
              + 2 * H * 4 * H * 2             # W_hh^T bf16 (double-buffered)
              + 6 * b_blk * H * 4)            # h_n/c_n blocks + h/c carries
        if fp <= _VMEM_BLOCK_BUDGET:
            return tq
    return cands[-1]


def _pick_batch_block(B):
    # Two "parallel" batch blocks let the serial recurrence megacore-shard
    # across the two TensorCores on v7x; harmless (one block) elsewhere.
    if B >= 16 and B % 16 == 0:
        return B // 2
    return B


# ----------------------------------------------------------------------------
# Kernel 1: row- and column-tiled matmul + bias ("parallel","parallel" grid).
# Used for the input-gate projection and for the output projection.
# ----------------------------------------------------------------------------
def _matmul_bias_kernel(x_ref,   # (TM, K)  activations (f32 or bf16)
                        w_ref,   # (K, TN)  weights, bf16
                        b_ref,   # (1, TN)  bias, f32
                        o_ref):  # (TM, TN) output, f32
    x = x_ref[...].astype(jnp.bfloat16)
    acc = jnp.dot(x, w_ref[...], preferred_element_type=jnp.float32)
    o_ref[...] = (acc + b_ref[...]).astype(o_ref.dtype)


def _matmul_bias(x, w_bf16, b):
    """(M, K) @ (K, N) + b  ->  (M, N) f32, (M, N)-tiled Pallas call."""
    M, K = x.shape
    _, N = w_bf16.shape
    TM, TN = _pick_matmul_tiles(M, K, N, x.dtype.itemsize)
    # M outer / N inner: the x row-block stays resident while weight slabs
    # stream; both axes are independent ("parallel") for TC sharding.
    grid = (M // TM, N // TN)
    return pl.pallas_call(
        _matmul_bias_kernel,
        out_shape=jax.ShapeDtypeStruct((M, N), jnp.float32),
        grid_spec=pltpu.PrefetchScalarGridSpec(
            num_scalar_prefetch=0,
            grid=grid,
            in_specs=[
                pl.BlockSpec((TM, K), lambda i, j: (i, 0)),
                pl.BlockSpec((K, TN), lambda i, j: (0, j)),
                pl.BlockSpec((1, TN), lambda i, j: (0, j)),
            ],
            out_specs=pl.BlockSpec((TM, TN), lambda i, j: (i, j)),
        ),
        compiler_params=pltpu.CompilerParams(
            dimension_semantics=("parallel", "parallel"),
            vmem_limit_bytes=_VMEM_LIMIT_BYTES),
    )(x, w_bf16, b)


# ----------------------------------------------------------------------------
# Kernel 2: LSTM recurrence, TQ timesteps per grid step, time-major layout.
# PyTorch gate order (i, f, g, o); x-gates are precomputed with bias folded in.
# ----------------------------------------------------------------------------
def _lstm_recurrence_kernel(gx_ref,     # (TQ, BB, 4H) precomputed x-gates, f32
                            whh_ref,    # (H, 4H)      W_hh^T, bf16
                            hseq_ref,   # (TQ, BB, H)  out: per-step h_t, bf16
                            hn_ref,     # (BB, H)      out: final hidden, f32
                            cn_ref,     # (BB, H)      out: final cell, f32
                            h_sc,       # (BB, H) f32 carry (persists over grid)
                            c_sc):      # (BB, H) f32 carry
    s = pl.program_id(1)
    H = h_sc.shape[-1]
    TQ = gx_ref.shape[0]

    @pl.when(s == 0)
    def _():
        h_sc[...] = jnp.zeros_like(h_sc)
        c_sc[...] = jnp.zeros_like(c_sc)

    # TODO(synk): pipeline_mode=pl.Buffered(1) on this grid-invariant block
    # would halve its VMEM residency (matters under v7x's 64 MiB ceiling).
    whh = whh_ref[...]
    h = h_sc[...]
    c = c_sc[...]

    # Statically unrolled time loop (TQ <= 32).  Each step loads only its own
    # (BB, 4H) gx row-block and streams h_t straight to hseq_ref, so only the
    # (BB, H) h/c carries stay live across steps (no hs list, no jnp.stack).
    for j in range(TQ):
        gates = gx_ref[j] + jnp.dot(h.astype(jnp.bfloat16), whh,
                                    preferred_element_type=jnp.float32)
        # NOTE: gate slices are lane-aligned (free sub-views) whenever H is a
        # multiple of 128; for smaller toy H they fall mid-vreg (still correct).
        i_g = jax.nn.sigmoid(gates[:, 0 * H:1 * H])
        f_g = jax.nn.sigmoid(gates[:, 1 * H:2 * H])
        g_g = jnp.tanh(gates[:, 2 * H:3 * H])
        o_g = jax.nn.sigmoid(gates[:, 3 * H:4 * H])
        c = f_g * c + i_g * g_g
        h = o_g * jnp.tanh(c)
        hseq_ref[j] = h.astype(hseq_ref.dtype)

    h_sc[...] = h
    c_sc[...] = c

    @pl.when(s == pl.num_programs(1) - 1)
    def _():
        hn_ref[...] = h
        cn_ref[...] = c


def _lstm_recurrence(gates_x, whh_bf16):
    """gates_x: (T, B, 4H) f32 (time-major).  Returns (hseq bf16, h_n, c_n)."""
    T, B, H4 = gates_x.shape
    H = H4 // 4
    BB = _pick_batch_block(B)
    TQ = _pick_time_tile(BB, T, H)
    grid = (B // BB, T // TQ)
    return pl.pallas_call(
        _lstm_recurrence_kernel,
        out_shape=(
            jax.ShapeDtypeStruct((T, B, H), jnp.bfloat16),   # hseq (bf16: the
            jax.ShapeDtypeStruct((B, H), jnp.float32),       #  output proj eats
            jax.ShapeDtypeStruct((B, H), jnp.float32),       #  bf16 anyway)
        ),
        grid_spec=pltpu.PrefetchScalarGridSpec(
            num_scalar_prefetch=0,
            grid=grid,
            in_specs=[
                pl.BlockSpec((TQ, BB, 4 * H), lambda b, s: (s, b, 0)),
                pl.BlockSpec((H, 4 * H), lambda b, s: (0, 0)),
            ],
            out_specs=[
                pl.BlockSpec((TQ, BB, H), lambda b, s: (s, b, 0)),
                pl.BlockSpec((BB, H), lambda b, s: (b, 0)),
                pl.BlockSpec((BB, H), lambda b, s: (b, 0)),
            ],
            scratch_shapes=[
                pltpu.VMEM((BB, H), jnp.float32),   # h carry
                pltpu.VMEM((BB, H), jnp.float32),   # c carry
            ],
        ),
        compiler_params=pltpu.CompilerParams(
            # batch blocks are independent ("parallel"; shards across the two
            # TCs on v7x).  The time axis is the recurrence and must stay
            # "arbitrary" (sequential): the h/c carries live in scratch.
            dimension_semantics=("parallel", "arbitrary"),
            vmem_limit_bytes=_VMEM_LIMIT_BYTES),
    )(gates_x, whh_bf16)


# ----------------------------------------------------------------------------
# Kernel 3: fully fused forward for small (toy) shapes — one pallas_call, all
# weights resident in VMEM, no gx/hseq HBM round trips, no extra launches.
# Rows of emb/gx/hseq/logits are time-major:  row = t*B + b.
# ----------------------------------------------------------------------------
def _fused_oracle_kernel(emb_ref,     # (T*B, E)  bf16
                         wih_ref,     # (E, 4H)   bf16
                         whh_ref,     # (H, 4H)   bf16
                         bias_ref,    # (1, 4H)   f32 (b_ih + b_hh)
                         wout_ref,    # (H, V)    bf16
                         bout_ref,    # (1, V)    f32
                         logits_ref,  # (T*B, V)  f32 out
                         hn_ref,      # (B, H)    f32 out
                         cn_ref,      # (B, H)    f32 out
                         gx_sc,       # (T*B, 4H) f32 scratch
                         hseq_sc):    # (T*B, H)  bf16 scratch
    TB, _ = emb_ref.shape
    H = whh_ref.shape[0]
    B = hn_ref.shape[0]
    T = TB // B

    # 1) all-timestep input-gate projection (one MXU matmul), bias folded in.
    gx_sc[...] = jnp.dot(emb_ref[...], wih_ref[...],
                         preferred_element_type=jnp.float32) + bias_ref[...]

    # 2) serial recurrence (statically unrolled; T is small on this path).
    whh = whh_ref[...]
    h = jnp.zeros((B, H), jnp.float32)
    c = jnp.zeros((B, H), jnp.float32)
    for j in range(T):
        gates = gx_sc[j * B:(j + 1) * B, :] + jnp.dot(
            h.astype(jnp.bfloat16), whh, preferred_element_type=jnp.float32)
        i_g = jax.nn.sigmoid(gates[:, 0 * H:1 * H])
        f_g = jax.nn.sigmoid(gates[:, 1 * H:2 * H])
        g_g = jnp.tanh(gates[:, 2 * H:3 * H])
        o_g = jax.nn.sigmoid(gates[:, 3 * H:4 * H])
        c = f_g * c + i_g * g_g
        h = o_g * jnp.tanh(c)
        hseq_sc[j * B:(j + 1) * B, :] = h.astype(hseq_sc.dtype)
    hn_ref[...] = h
    cn_ref[...] = c

    # 3) all-timestep output projection (one MXU matmul).
    logits_ref[...] = jnp.dot(hseq_sc[...], wout_ref[...],
                              preferred_element_type=jnp.float32) + bout_ref[...]


def _fused_oracle(emb2d_tm, wih_bf, whh_bf, bias, wout_bf, bout, B, T):
    H = whh_bf.shape[0]
    V = wout_bf.shape[1]
    return pl.pallas_call(
        _fused_oracle_kernel,
        out_shape=(
            jax.ShapeDtypeStruct((T * B, V), jnp.float32),
            jax.ShapeDtypeStruct((B, H), jnp.float32),
            jax.ShapeDtypeStruct((B, H), jnp.float32),
        ),
        scratch_shapes=[
            pltpu.VMEM((T * B, 4 * H), jnp.float32),
            pltpu.VMEM((T * B, H), jnp.bfloat16),
        ],
    )(emb2d_tm, wih_bf, whh_bf, bias, wout_bf, bout)


# ----------------------------------------------------------------------------
# Wrapper: Oracle.forward(x)  ->  (logits, (h_n, c_n)).
# ----------------------------------------------------------------------------
def _oracle_forward_impl(params, x, fuse):
    emb_tbl = params["embedding"]          # (V, E)
    wih_t = params["wih_t"]                # (E, 4H)   weight_ih_l0^T
    whh_t = params["whh_t"]                # (H, 4H)   weight_hh_l0^T
    bias = params["bias"]                  # (1, 4H)   bias_ih + bias_hh
    wout_t = params["wout_t"]              # (H, V)    output_layer.weight^T
    bout = params["bout"]                  # (1, V)    output_layer.bias

    B, T = x.shape
    E = wih_t.shape[0]
    H = whh_t.shape[0]
    V = wout_t.shape[1]

    wih_bf = wih_t.astype(jnp.bfloat16)
    whh_bf = whh_t.astype(jnp.bfloat16)
    wout_bf = wout_t.astype(jnp.bfloat16)

    # Embedding lookup (a gather) stays in plain JAX.  The table is cast to
    # bf16 once so the gathered activations already read half the HBM bytes
    # (the matmul kernels round x to bf16 anyway -> identical numerics).
    # Gather with x.T so activations come out time-major with no transpose.
    emb_tm = jnp.take(emb_tbl.astype(jnp.bfloat16), x.T, axis=0)   # (T, B, E)

    if fuse:
        logits2d, h_n, c_n = _fused_oracle(
            emb_tm.reshape(T * B, E), wih_bf, whh_bf, bias, wout_bf, bout, B, T)
        logits = logits2d.reshape(T, B, V).transpose(1, 0, 2)      # (B, T, V)
    else:
        # 1) parallel input-gate projection for all timesteps (bias folded in).
        gx = _matmul_bias(emb_tm.reshape(T * B, E), wih_bf, bias)  # f32
        gates_x = gx.reshape(T, B, 4 * H)                          # metadata only
        # 2) serial LSTM recurrence (only h @ W_hh^T stays per step).
        hseq, h_n, c_n = _lstm_recurrence(gates_x, whh_bf)         # hseq bf16
        # 3) parallel output projection.  Transpose the (cheap, bf16, H-wide)
        #    hseq back to batch-major so logits come out directly as (B, T, V)
        #    instead of transposing the (f32, V-wide) logits.
        hseq_bt = jnp.transpose(hseq, (1, 0, 2)).reshape(B * T, H)
        logits = _matmul_bias(hseq_bt, wout_bf, bout).reshape(B, T, V)

    # TODO(synk): support a caller-provided initial hidden state (torch's
    # optional `hidden` argument); the torch default (zeros) is implemented.
    return logits, (h_n[None, :, :], c_n[None, :, :])


_oracle_forward_jit = jax.jit(_oracle_forward_impl, static_argnames=("fuse",))


def oracle_forward(params, x, fuse=None):
    if fuse is None:
        B, T = x.shape
        E = params["wih_t"].shape[0]
        H = params["whh_t"].shape[0]
        V = params["wout_t"].shape[1]
        act_bytes = B * T * (2 * E + 16 * H + 2 * H + 4 * V)
        w_bytes = 2 * (E * 4 * H + 4 * H * H + H * V) + 4 * (4 * H + V)
        fuse = (T <= 64) and (act_bytes + w_bytes <= (4 << 20))
    return _oracle_forward_jit(params, x, fuse=fuse)


# ----------------------------------------------------------------------------
# Pure-JAX f32 reference (mirrors torch nn.LSTM semantics) for validation.
# ----------------------------------------------------------------------------
def oracle_forward_ref(params, x):
    emb_tbl = params["embedding"]
    wih_t = params["wih_t"]
    whh_t = params["whh_t"]
    bias = params["bias"][0]
    wout_t = params["wout_t"]
    bout = params["bout"][0]

    B, T = x.shape
    H = whh_t.shape[0]
    emb = jnp.take(emb_tbl, x, axis=0)               # (B, T, E)
    emb_t = jnp.transpose(emb, (1, 0, 2))            # (T, B, E)

    def step(carry, x_t):
        h, c = carry
        gates = x_t @ wih_t + h @ whh_t + bias
        i_g = jax.nn.sigmoid(gates[:, 0 * H:1 * H])
        f_g = jax.nn.sigmoid(gates[:, 1 * H:2 * H])
        g_g = jnp.tanh(gates[:, 2 * H:3 * H])
        o_g = jax.nn.sigmoid(gates[:, 3 * H:4 * H])
        c_new = f_g * c + i_g * g_g
        h_new = o_g * jnp.tanh(c_new)
        return (h_new, c_new), h_new

    init = (jnp.zeros((B, H), jnp.float32), jnp.zeros((B, H), jnp.float32))
    (h_n, c_n), hs = lax.scan(step, init, emb_t)
    logits_t = hs @ wout_t + bout                    # (T, B, V)
    logits = jnp.transpose(logits_t, (1, 0, 2))
    return logits, (h_n[None], c_n[None])


# ----------------------------------------------------------------------------
# Deterministic parameter init (shapes match Oracle.__init__).
# ----------------------------------------------------------------------------
def init_params(key, vocab_size, embedding_dim, hidden_dim):
    k0, k1, k2, k3, k4, k5, k6 = jax.random.split(key, 7)
    scale = 0.1
    return {
        "embedding": scale * jax.random.normal(
            k0, (vocab_size, embedding_dim), jnp.float32),
        # stored pre-transposed for the kernels:
        "wih_t": scale * jax.random.normal(
            k1, (embedding_dim, 4 * hidden_dim), jnp.float32),
        "whh_t": scale * jax.random.normal(
            k2, (hidden_dim, 4 * hidden_dim), jnp.float32),
        # bias = bias_ih + bias_hh
        "bias": (scale * jax.random.normal(k3, (1, 4 * hidden_dim), jnp.float32)
                 + scale * jax.random.normal(k4, (1, 4 * hidden_dim),
                                             jnp.float32)),
        "wout_t": scale * jax.random.normal(
            k5, (hidden_dim, vocab_size), jnp.float32),
        "bout": scale * jax.random.normal(k6, (1, vocab_size), jnp.float32),
    }


if __name__ == "__main__":
    def check(name, params, x, fuse, tol):
        logits, (h_n, c_n) = oracle_forward(params, x, fuse=fuse)
        jax.block_until_ready(logits)
        jax.block_until_ready(h_n)
        jax.block_until_ready(c_n)
        logits_ref, (h_ref, c_ref) = oracle_forward_ref(params, x)
        assert logits.shape == logits_ref.shape, name
        assert h_n.shape == h_ref.shape and c_n.shape == c_ref.shape, name
        # bf16 MXU operands with f32 accumulation -> loose tolerance by design.
        assert jnp.allclose(logits, logits_ref, atol=tol, rtol=tol), name
        assert jnp.allclose(h_n, h_ref, atol=tol, rtol=tol), name
        assert jnp.allclose(c_n, c_ref, atol=tol, rtol=tol), name

    key = jax.random.PRNGKey(0)

    # Toy config from the module spec -> single fused kernel (overhead-bound).
    VOCAB, EMB, HID, SEQ, BATCH = 32, 32, 32, 8, 2
    k1, k2, key = jax.random.split(key, 3)
    params = init_params(k1, VOCAB, EMB, HID)
    x = jax.random.randint(k2, (BATCH, SEQ), 0, VOCAB, dtype=jnp.int32)
    check("fused_toy", params, x, fuse=None, tol=2e-2)

    # Larger shapes exercise the split (3-kernel) production path, including a
    # multi-block matmul grid, multiple time blocks, and 2 parallel batch
    # blocks in the recurrence.
    VOCAB2, EMB2, HID2, SEQ2, BATCH2 = 512, 128, 128, 64, 16
    k3, k4, key = jax.random.split(key, 3)
    params2 = init_params(k3, VOCAB2, EMB2, HID2)
    x2 = jax.random.randint(k4, (BATCH2, SEQ2), 0, VOCAB2, dtype=jnp.int32)
    check("split_path", params2, x2, fuse=False, tol=3e-2)

    print("KERNEL_OK")
</pallas_src>

<mosaic_0001>
module attributes {stable_mosaic.version = 11 : i64} {
  func.func @_fused_oracle_kernel(%arg0: memref<16x32xbf16, #tpu.memory_space<vmem>>, %arg1: memref<32x128xbf16, #tpu.memory_space<vmem>>, %arg2: memref<32x128xbf16, #tpu.memory_space<vmem>>, %arg3: memref<1x128xf32, #tpu.memory_space<vmem>>, %arg4: memref<32x32xbf16, #tpu.memory_space<vmem>>, %arg5: memref<1x32xf32, #tpu.memory_space<vmem>>, %arg6: memref<16x32xf32, #tpu.memory_space<vmem>>, %arg7: memref<2x32xf32, #tpu.memory_space<vmem>>, %arg8: memref<2x32xf32, #tpu.memory_space<vmem>>, %arg9: memref<16x128xf32, #tpu.memory_space<vmem>>, %arg10: memref<16x32xbf16, #tpu.memory_space<vmem>>) attributes {dimension_semantics = [], scalar_prefetch = 0 : i64, scratch_operands = 2 : i64, tpu.core_type = #tpu.core_type<tc>} {
    %c0 = arith.constant 0 : index
    %c0_0 = arith.constant 0 : index
    %0 = vector.load %arg0[%c0, %c0_0] : memref<16x32xbf16, #tpu.memory_space<vmem>>, vector<16x32xbf16>
    %c0_1 = arith.constant 0 : index
    %c0_2 = arith.constant 0 : index
    %1 = vector.load %arg1[%c0_1, %c0_2] : memref<32x128xbf16, #tpu.memory_space<vmem>>, vector<32x128xbf16>
    %cst = arith.constant dense<0.000000e+00> : vector<16x128xf32>
    %2 = tpu.matmul %0, %1, %cst {dimension_numbers = #tpu.dot_dimension_numbers<[1], [0], [0], [1], [0, 0, 1, 1], [], []>} : vector<16x32xbf16>, vector<32x128xbf16>, vector<16x128xf32> -> vector<16x128xf32>
    %c0_3 = arith.constant 0 : index
    %c0_4 = arith.constant 0 : index
    %3 = vector.load %arg3[%c0_3, %c0_4] : memref<1x128xf32, #tpu.memory_space<vmem>>, vector<1x128xf32>
    %4 = vector.broadcast %3 : vector<1x128xf32> to vector<16x128xf32>
    %5 = arith.addf %2, %4 : vector<16x128xf32>
    %c0_5 = arith.constant 0 : index
    %c0_6 = arith.constant 0 : index
    %6 = vector.load %arg9[%c0_5, %c0_6] : memref<16x128xf32, #tpu.memory_space<vmem>>, vector<16x128xf32>
    tpu.vector_store %arg9[%c0_5, %c0_6], %5 {strides = array<i32>} : memref<16x128xf32, #tpu.memory_space<vmem>>, vector<16x128xf32>,
    %c0_7 = arith.constant 0 : index
    %c0_8 = arith.constant 0 : index
    %7 = vector.load %arg2[%c0_7, %c0_8] : memref<32x128xbf16, #tpu.memory_space<vmem>>, vector<32x128xbf16>
    %cst_9 = arith.constant 0.000000e+00 : f32
    %8 = vector.broadcast %cst_9 : f32 to vector<2x32xf32>
    %cst_10 = arith.constant 0.000000e+00 : f32
    %9 = vector.broadcast %cst_10 : f32 to vector<2x32xf32>
    %c0_11 = arith.constant 0 : index
    %c0_12 = arith.constant 0 : index
    %10 = vector.load %arg9[%c0_11, %c0_12] : memref<16x128xf32, #tpu.memory_space<vmem>>, vector<2x128xf32>
    %11 = arith.truncf %8 : vector<2x32xf32> to vector<2x32xbf16>
    %cst_13 = arith.constant dense<0.000000e+00> : vector<2x128xf32>
    %12 = tpu.matmul %11, %7, %cst_13 {dimension_numbers = #tpu.dot_dimension_numbers<[1], [0], [0], [1], [0, 0, 1, 1], [], []>} : vector<2x32xbf16>, vector<32x128xbf16>, vector<2x128xf32> -> vector<2x128xf32>
    %13 = arith.addf %10, %12 : vector<2x128xf32>
    %14 = vector.extract_strided_slice %13 {offsets = [0, 0], sizes = [2, 32], strides = [1, 1]} : vector<2x128xf32> to vector<2x32xf32>
    %15 = arith.negf %14 : vector<2x32xf32>
    %16 = math.exp %15 : vector<2x32xf32>
    %cst_14 = arith.constant 1.000000e+00 : f32
    %17 = vector.broadcast %cst_14 : f32 to vector<2x32xf32>
    %18 = arith.addf %17, %16 : vector<2x32xf32>
    %19 = arith.divf %17, %18 : vector<2x32xf32>
    %20 = vector.extract_strided_slice %13 {offsets = [0, 32], sizes = [2, 32], strides = [1, 1]} : vector<2x128xf32> to vector<2x32xf32>
    %21 = arith.negf %20 : vector<2x32xf32>
    %22 = math.exp %21 : vector<2x32xf32>
    %cst_15 = arith.constant 1.000000e+00 : f32
    %23 = vector.broadcast %cst_15 : f32 to vector<2x32xf32>
    %24 = arith.addf %23, %22 : vector<2x32xf32>
    %25 = arith.divf %23, %24 : vector<2x32xf32>
    %26 = vector.extract_strided_slice %13 {offsets = [0, 64], sizes = [2, 32], strides = [1, 1]} : vector<2x128xf32> to vector<2x32xf32>
    %27 = math.tanh %26 : vector<2x32xf32>
    %28 = vector.extract_strided_slice %13 {offsets = [0, 96], sizes = [2, 32], strides = [1, 1]} : vector<2x128xf32> to vector<2x32xf32>
    %29 = arith.negf %28 : vector<2x32xf32>
    %30 = math.exp %29 : vector<2x32xf32>
    %cst_16 = arith.constant 1.000000e+00 : f32
    %31 = vector.broadcast %cst_16 : f32 to vector<2x32xf32>
    %32 = arith.addf %31, %30 : vector<2x32xf32>
    %33 = arith.divf %31, %32 : vector<2x32xf32>
    %34 = arith.mulf %25, %9 : vector<2x32xf32>
    %35 = arith.mulf %19, %27 : vector<2x32xf32>
    %36 = arith.addf %34, %35 : vector<2x32xf32>
    %37 = math.tanh %36 : vector<2x32xf32>
    %38 = arith.mulf %33, %37 : vector<2x32xf32>
    %39 = arith.truncf %38 : vector<2x32xf32> to vector<2x32xbf16>
    %c0_17 = arith.constant 0 : index
    %c0_18 = arith.constant 0 : index
    %40 = vector.load %arg10[%c0_17, %c0_18] : memref<16x32xbf16, #tpu.memory_space<vmem>>, vector<2x32xbf16>
    tpu.vector_store %arg10[%c0_17, %c0_18], %39 {strides = array<i32>} : memref<16x32xbf16, #tpu.memory_space<vmem>>, vector<2x32xbf16>,
    %c2 = arith.constant 2 : index
    %c0_19 = arith.constant 0 : index
    %41 = vector.load %arg9[%c2, %c0_19] : memref<16x128xf32, #tpu.memory_space<vmem>>, vector<2x128xf32>
    %42 = arith.truncf %38 : vector<2x32xf32> to vector<2x32xbf16>
    %cst_20 = arith.constant dense<0.000000e+00> : vector<2x128xf32>
    %43 = tpu.matmul %42, %7, %cst_20 {dimension_numbers = #tpu.dot_dimension_numbers<[1], [0], [0], [1], [0, 0, 1, 1], [], []>} : vector<2x32xbf16>, vector<32x128xbf16>, vector<2x128xf32> -> vector<2x128xf32>
    %44 = arith.addf %41, %43 : vector<2x128xf32>
    %45 = vector.extract_strided_slice %44 {offsets = [0, 0], sizes = [2, 32], strides = [1, 1]} : vector<2x128xf32> to vector<2x32xf32>
    %46 = arith.negf %45 : vector<2x32xf32>
    %47 = math.exp %46 : vector<2x32xf32>
    %cst_21 = arith.constant 1.000000e+00 : f32
    %48 = vector.broadcast %cst_21 : f32 to vector<2x32xf32>
    %49 = arith.addf %48, %47 : vector<2x32xf32>
    %50 = arith.divf %48, %49 : vector<2x32xf32>
    %51 = vector.extract_strided_slice %44 {offsets = [0, 32], sizes = [2, 32], strides = [1, 1]} : vector<2x128xf32> to vector<2x32xf32>
    %52 = arith.negf %51 : vector<2x32xf32>
    %53 = math.exp %52 : vector<2x32xf32>
    %cst_22 = arith.constant 1.000000e+00 : f32
    %54 = vector.broadcast %cst_22 : f32 to vector<2x32xf32>
    %55 = arith.addf %54, %53 : vector<2x32xf32>
    %56 = arith.divf %54, %55 : vector<2x32xf32>
    %57 = vector.extract_strided_slice %44 {offsets = [0, 64], sizes = [2, 32], strides = [1, 1]} : vector<2x128xf32> to vector<2x32xf32>
    %58 = math.tanh %57 : vector<2x32xf32>
    %59 = vector.extract_strided_slice %44 {offsets = [0, 96], sizes = [2, 32], strides = [1, 1]} : vector<2x128xf32> to vector<2x32xf32>
    %60 = arith.negf %59 : vector<2x32xf32>
    %61 = math.exp %60 : vector<2x32xf32>
    %cst_23 = arith.constant 1.000000e+00 : f32
    %62 = vector.broadcast %cst_23 : f32 to vector<2x32xf32>
    %63 = arith.addf %62, %61 : vector<2x32xf32>
    %64 = arith.divf %62, %63 : vector<2x32xf32>
    %65 = arith.mulf %56, %36 : vector<2x32xf32>
    %66 = arith.mulf %50, %58 : vector<2x32xf32>
    %67 = arith.addf %65, %66 : vector<2x32xf32>
    %68 = math.tanh %67 : vector<2x32xf32>
    %69 = arith.mulf %64, %68 : vector<2x32xf32>
    %70 = arith.truncf %69 : vector<2x32xf32> to vector<2x32xbf16>
    %c2_24 = arith.constant 2 : index
    %c0_25 = arith.constant 0 : index
    %71 = vector.load %arg10[%c2_24, %c0_25] : memref<16x32xbf16, #tpu.memory_space<vmem>>, vector<2x32xbf16>
    tpu.vector_store %arg10[%c2_24, %c0_25], %70 {strides = array<i32>} : memref<16x32xbf16, #tpu.memory_space<vmem>>, vector<2x32xbf16>,
    %c4 = arith.constant 4 : index
    %c0_26 = arith.constant 0 : index
    %72 = vector.load %arg9[%c4, %c0_26] : memref<16x128xf32, #tpu.memory_space<vmem>>, vector<2x128xf32>
    %73 = arith.truncf %69 : vector<2x32xf32> to vector<2x32xbf16>
    %cst_27 = arith.constant dense<0.000000e+00> : vector<2x128xf32>
    %74 = tpu.matmul %73, %7, %cst_27 {dimension_numbers = #tpu.dot_dimension_numbers<[1], [0], [0], [1], [0, 0, 1, 1], [], []>} : vector<2x32xbf16>, vector<32x128xbf16>, vector<2x128xf32> -> vector<2x128xf32>
    %75 = arith.addf %72, %74 : vector<2x128xf32>
    %76 = vector.extract_strided_slice %75 {offsets = [0, 0], sizes = [2, 32], strides = [1, 1]} : vector<2x128xf32> to vector<2x32xf32>
    %77 = arith.negf %76 : vector<2x32xf32>
    %78 = math.exp %77 : vector<2x32xf32>
    %cst_28 = arith.constant 1.000000e+00 : f32
    %79 = vector.broadcast %cst_28 : f32 to vector<2x32xf32>
    %80 = arith.addf %79, %78 : vector<2x32xf32>
    %81 = arith.divf %79, %80 : vector<2x32xf32>
    %82 = vector.extract_strided_slice %75 {offsets = [0, 32], sizes = [2, 32], strides = [1, 1]} : vector<2x128xf32> to vector<2x32xf32>
    %83 = arith.negf %82 : vector<2x32xf32>
    %84 = math.exp %83 : vector<2x32xf32>
    %cst_29 = arith.constant 1.000000e+00 : f32
    %85 = vector.broadcast %cst_29 : f32 to vector<2x32xf32>
    %86 = arith.addf %85, %84 : vector<2x32xf32>
    %87 = arith.divf %85, %86 : vector<2x32xf32>
    %88 = vector.extract_strided_slice %75 {offsets = [0, 64], sizes = [2, 32], strides = [1, 1]} : vector<2x128xf32> to vector<2x32xf32>
    %89 = math.tanh %88 : vector<2x32xf32>
    %90 = vector.extract_strided_slice %75 {offsets = [0, 96], sizes = [2, 32], strides = [1, 1]} : vector<2x128xf32> to vector<2x32xf32>
    %91 = arith.negf %90 : vector<2x32xf32>
    %92 = math.exp %91 : vector<2x32xf32>
    %cst_30 = arith.constant 1.000000e+00 : f32
    %93 = vector.broadcast %cst_30 : f32 to vector<2x32xf32>
    %94 = arith.addf %93, %92 : vector<2x32xf32>
    %95 = arith.divf %93, %94 : vector<2x32xf32>
    %96 = arith.mulf %87, %67 : vector<2x32xf32>
    %97 = arith.mulf %81, %89 : vector<2x32xf32>
    %98 = arith.addf %96, %97 : vector<2x32xf32>
    %99 = math.tanh %98 : vector<2x32xf32>
    %100 = arith.mulf %95, %99 : vector<2x32xf32>
    %101 = arith.truncf %100 : vector<2x32xf32> to vector<2x32xbf16>
    %c4_31 = arith.constant 4 : index
    %c0_32 = arith.constant 0 : index
    %102 = vector.load %arg10[%c4_31, %c0_32] : memref<16x32xbf16, #tpu.memory_space<vmem>>, vector<2x32xbf16>
    tpu.vector_store %arg10[%c4_31, %c0_32], %101 {strides = array<i32>} : memref<16x32xbf16, #tpu.memory_space<vmem>>, vector<2x32xbf16>,
    %c6 = arith.constant 6 : index
    %c0_33 = arith.constant 0 : index
    %103 = vector.load %arg9[%c6, %c0_33] : memref<16x128xf32, #tpu.memory_space<vmem>>, vector<2x128xf32>
    %104 = arith.truncf %100 : vector<2x32xf32> to vector<2x32xbf16>
    %cst_34 = arith.constant dense<0.000000e+00> : vector<2x128xf32>
    %105 = tpu.matmul %104, %7, %cst_34 {dimension_numbers = #tpu.dot_dimension_numbers<[1], [0], [0], [1], [0, 0, 1, 1], [], []>} : vector<2x32xbf16>, vector<32x128xbf16>, vector<2x128xf32> -> vector<2x128xf32>
    %106 = arith.addf %103, %105 : vector<2x128xf32>
    %107 = vector.extract_strided_slice %106 {offsets = [0, 0], sizes = [2, 32], strides = [1, 1]} : vector<2x128xf32> to vector<2x32xf32>
    %108 = arith.negf %107 : vector<2x32xf32>
    %109 = math.exp %108 : vector<2x32xf32>
    %cst_35 = arith.constant 1.000000e+00 : f32
    %110 = vector.broadcast %cst_35 : f32 to vector<2x32xf32>
    %111 = arith.addf %110, %109 : vector<2x32xf32>
    %112 = arith.divf %110, %111 : vector<2x32xf32>
    %113 = vector.extract_strided_slice %106 {offsets = [0, 32], sizes = [2, 32], strides = [1, 1]} : vector<2x128xf32> to vector<2x32xf32>
    %114 = arith.negf %113 : vector<2x32xf32>
    %115 = math.exp %114 : vector<2x32xf32>
    %cst_36 = arith.constant 1.000000e+00 : f32
    %116 = vector.broadcast %cst_36 : f32 to vector<2x32xf32>
    %117 = arith.addf %116, %115 : vector<2x32xf32>
    %118 = arith.divf %116, %117 : vector<2x32xf32>
    %119 = vector.extract_strided_slice %106 {offsets = [0, 64], sizes = [2, 32], strides = [1, 1]} : vector<2x128xf32> to vector<2x32xf32>
    %120 = math.tanh %119 : vector<2x32xf32>
    %121 = vector.extract_strided_slice %106 {offsets = [0, 96], sizes = [2, 32], strides = [1, 1]} : vector<2x128xf32> to vector<2x32xf32>
    %122 = arith.negf %121 : vector<2x32xf32>
    %123 = math.exp %122 : vector<2x32xf32>
    %cst_37 = arith.constant 1.000000e+00 : f32
    %124 = vector.broadcast %cst_37 : f32 to vector<2x32xf32>
    %125 = arith.addf %124, %123 : vector<2x32xf32>
    %126 = arith.divf %124, %125 : vector<2x32xf32>
    %127 = arith.mulf %118, %98 : vector<2x32xf32>
    %128 = arith.mulf %112, %120 : vector<2x32xf32>
    %129 = arith.addf %127, %128 : vector<2x32xf32>
    %130 = math.tanh %129 : vector<2x32xf32>
    %131 = arith.mulf %126, %130 : vector<2x32xf32>
    %132 = arith.truncf %131 : vector<2x32xf32> to vector<2x32xbf16>
    %c6_38 = arith.constant 6 : index
    %c0_39 = arith.constant 0 : index
    %133 = vector.load %arg10[%c6_38, %c0_39] : memref<16x32xbf16, #tpu.memory_space<vmem>>, vector<2x32xbf16>
    tpu.vector_store %arg10[%c6_38, %c0_39], %132 {strides = array<i32>} : memref<16x32xbf16, #tpu.memory_space<vmem>>, vector<2x32xbf16>,
    %c8 = arith.constant 8 : index
    %c0_40 = arith.constant 0 : index
    %134 = vector.load %arg9[%c8, %c0_40] : memref<16x128xf32, #tpu.memory_space<vmem>>, vector<2x128xf32>
    %135 = arith.truncf %131 : vector<2x32xf32> to vector<2x32xbf16>
    %cst_41 = arith.constant dense<0.000000e+00> : vector<2x128xf32>
    %136 = tpu.matmul %135, %7, %cst_41 {dimension_numbers = #tpu.dot_dimension_numbers<[1], [0], [0], [1], [0, 0, 1, 1], [], []>} : vector<2x32xbf16>, vector<32x128xbf16>, vector<2x128xf32> -> vector<2x128xf32>
    %137 = arith.addf %134, %136 : vector<2x128xf32>
    %138 = vector.extract_strided_slice %137 {offsets = [0, 0], sizes = [2, 32], strides = [1, 1]} : vector<2x128xf32> to vector<2x32xf32>
    %139 = arith.negf %138 : vector<2x32xf32>
    %140 = math.exp %139 : vector<2x32xf32>
    %cst_42 = arith.constant 1.000000e+00 : f32
    %141 = vector.broadcast %cst_42 : f32 to vector<2x32xf32>
    %142 = arith.addf %141, %140 : vector<2x32xf32>
    %143 = arith.divf %141, %142 : vector<2x32xf32>
    %144 = vector.extract_strided_slice %137 {offsets = [0, 32], sizes = [2, 32], strides = [1, 1]} : vector<2x128xf32> to vector<2x32xf32>
    %145 = arith.negf %144 : vector<2x32xf32>
    %146 = math.exp %145 : vector<2x32xf32>
    %cst_43 = arith.constant 1.000000e+00 : f32
    %147 = vector.broadcast %cst_43 : f32 to vector<2x32xf32>
    %148 = arith.addf %147, %146 : vector<2x32xf32>
    %149 = arith.divf %147, %148 : vector<2x32xf32>
    %150 = vector.extract_strided_slice %137 {offsets = [0, 64], sizes = [2, 32], strides = [1, 1]} : vector<2x128xf32> to vector<2x32xf32>
    %151 = math.tanh %150 : vector<2x32xf32>
    %152 = vector.extract_strided_slice %137 {offsets = [0, 96], sizes = [2, 32], strides = [1, 1]} : vector<2x128xf32> to vector<2x32xf32>
    %153 = arith.negf %152 : vector<2x32xf32>
    %154 = math.exp %153 : vector<2x32xf32>
    %cst_44 = arith.constant 1.000000e+00 : f32
    %155 = vector.broadcast %cst_44 : f32 to vector<2x32xf32>
    %156 = arith.addf %155, %154 : vector<2x32xf32>
    %157 = arith.divf %155, %156 : vector<2x32xf32>
    %158 = arith.mulf %149, %129 : vector<2x32xf32>
    %159 = arith.mulf %143, %151 : vector<2x32xf32>
    %160 = arith.addf %158, %159 : vector<2x32xf32>
    %161 = math.tanh %160 : vector<2x32xf32>
    %162 = arith.mulf %157, %161 : vector<2x32xf32>
    %163 = arith.truncf %162 : vector<2x32xf32> to vector<2x32xbf16>
    %c8_45 = arith.constant 8 : index
    %c0_46 = arith.constant 0 : index
    %164 = vector.load %arg10[%c8_45, %c0_46] : memref<16x32xbf16, #tpu.memory_space<vmem>>, vector<2x32xbf16>
    tpu.vector_store %arg10[%c8_45, %c0_46], %163 {strides = array<i32>} : memref<16x32xbf16, #tpu.memory_space<vmem>>, vector<2x32xbf16>,
    %c10 = arith.constant 10 : index
    %c0_47 = arith.constant 0 : index
    %165 = vector.load %arg9[%c10, %c0_47] : memref<16x128xf32, #tpu.memory_space<vmem>>, vector<2x128xf32>
    %166 = arith.truncf %162 : vector<2x32xf32> to vector<2x32xbf16>
    %cst_48 = arith.constant dense<0.000000e+00> : vector<2x128xf32>
    %167 = tpu.matmul %166, %7, %cst_48 {dimension_numbers = #tpu.dot_dimension_numbers<[1], [0], [0], [1], [0, 0, 1, 1], [], []>} : vector<2x32xbf16>, vector<32x128xbf16>, vector<2x128xf32> -> vector<2x128xf32>
    %168 = arith.addf %165, %167 : vector<2x128xf32>
    %169 = vector.extract_strided_slice %168 {offsets = [0, 0], sizes = [2, 32], strides = [1, 1]} : vector<2x128xf32> to vector<2x32xf32>
    %170 = arith.negf %169 : vector<2x32xf32>
    %171 = math.exp %170 : vector<2x32xf32>
    %cst_49 = arith.constant 1.000000e+00 : f32
    %172 = vector.broadcast %cst_49 : f32 to vector<2x32xf32>
    %173 = arith.addf %172, %171 : vector<2x32xf32>
    %174 = arith.divf %172, %173 : vector<2x32xf32>
    %175 = vector.extract_strided_slice %168 {offsets = [0, 32], sizes = [2, 32], strides = [1, 1]} : vector<2x128xf32> to vector<2x32xf32>
    %176 = arith.negf %175 : vector<2x32xf32>
    %177 = math.exp %176 : vector<2x32xf32>
    %cst_50 = arith.constant 1.000000e+00 : f32
    %178 = vector.broadcast %cst_50 : f32 to vector<2x32xf32>
    %179 = arith.addf %178, %177 : vector<2x32xf32>
    %180 = arith.divf %178, %179 : vector<2x32xf32>
    %181 = vector.extract_strided_slice %168 {offsets = [0, 64], sizes = [2, 32], strides = [1, 1]} : vector<2x128xf32> to vector<2x32xf32>
    %182 = math.tanh %181 : vector<2x32xf32>
    %183 = vector.extract_strided_slice %168 {offsets = [0, 96], sizes = [2, 32], strides = [1, 1]} : vector<2x128xf32> to vector<2x32xf32>
    %184 = arith.negf %183 : vector<2x32xf32>
    %185 = math.exp %184 : vector<2x32xf32>
    %cst_51 = arith.constant 1.000000e+00 : f32
    %186 = vector.broadcast %cst_51 : f32 to vector<2x32xf32>
    %187 = arith.addf %186, %185 : vector<2x32xf32>
    %188 = arith.divf %186, %187 : vector<2x32xf32>
    %189 = arith.mulf %180, %160 : vector<2x32xf32>
    %190 = arith.mulf %174, %182 : vector<2x32xf32>
    %191 = arith.addf %189, %190 : vector<2x32xf32>
    %192 = math.tanh %191 : vector<2x32xf32>
    %193 = arith.mulf %188, %192 : vector<2x32xf32>
    %194 = arith.truncf %193 : vector<2x32xf32> to vector<2x32xbf16>
    %c10_52 = arith.constant 10 : index
    %c0_53 = arith.constant 0 : index
    %195 = vector.load %arg10[%c10_52, %c0_53] : memref<16x32xbf16, #tpu.memory_space<vmem>>, vector<2x32xbf16>
    tpu.vector_store %arg10[%c10_52, %c0_53], %194 {strides = array<i32>} : memref<16x32xbf16, #tpu.memory_space<vmem>>, vector<2x32xbf16>,
    %c12 = arith.constant 12 : index
    %c0_54 = arith.constant 0 : index
    %196 = vector.load %arg9[%c12, %c0_54] : memref<16x128xf32, #tpu.memory_space<vmem>>, vector<2x128xf32>
    %197 = arith.truncf %193 : vector<2x32xf32> to vector<2x32xbf16>
    %cst_55 = arith.constant dense<0.000000e+00> : vector<2x128xf32>
    %198 = tpu.matmul %197, %7, %cst_55 {dimension_numbers = #tpu.dot_dimension_numbers<[1], [0], [0], [1], [0, 0, 1, 1], [], []>} : vector<2x32xbf16>, vector<32x128xbf16>, vector<2x128xf32> -> vector<2x128xf32>
    %199 = arith.addf %196, %198 : vector<2x128xf32>
    %200 = vector.extract_strided_slice %199 {offsets = [0, 0], sizes = [2, 32], strides = [1, 1]} : vector<2x128xf32> to vector<2x32xf32>
    %201 = arith.negf %200 : vector<2x32xf32>
    %202 = math.exp %201 : vector<2x32xf32>
    %cst_56 = arith.constant 1.000000e+00 : f32
    %203 = vector.broadcast %cst_56 : f32 to vector<2x32xf32>
    %204 = arith.addf %203, %202 : vector<2x32xf32>
    %205 = arith.divf %203, %204 : vector<2x32xf32>
    %206 = vector.extract_strided_slice %199 {offsets = [0, 32], sizes = [2, 32], strides = [1, 1]} : vector<2x128xf32> to vector<2x32xf32>
    %207 = arith.negf %206 : vector<2x32xf32>
    %208 = math.exp %207 : vector<2x32xf32>
    %cst_57 = arith.constant 1.000000e+00 : f32
    %209 = vector.broadcast %cst_57 : f32 to vector<2x32xf32>
    %210 = arith.addf %209, %208 : vector<2x32xf32>
    %211 = arith.divf %209, %210 : vector<2x32xf32>
    %212 = vector.extract_strided_slice %199 {offsets = [0, 64], sizes = [2, 32], strides = [1, 1]} : vector<2x128xf32> to vector<2x32xf32>
    %213 = math.tanh %212 : vector<2x32xf32>
    %214 = vector.extract_strided_slice %199 {offsets = [0, 96], sizes = [2, 32], strides = [1, 1]} : vector<2x128xf32> to vector<2x32xf32>
    %215 = arith.negf %214 : vector<2x32xf32>
    %216 = math.exp %215 : vector<2x32xf32>
    %cst_58 = arith.constant 1.000000e+00 : f32
    %217 = vector.broadcast %cst_58 : f32 to vector<2x32xf32>
    %218 = arith.addf %217, %216 : vector<2x32xf32>
    %219 = arith.divf %217, %218 : vector<2x32xf32>
    %220 = arith.mulf %211, %191 : vector<2x32xf32>
    %221 = arith.mulf %205, %213 : vector<2x32xf32>
    %222 = arith.addf %220, %221 : vector<2x32xf32>
    %223 = math.tanh %222 : vector<2x32xf32>
    %224 = arith.mulf %219, %223 : vector<2x32xf32>
    %225 = arith.truncf %224 : vector<2x32xf32> to vector<2x32xbf16>
    %c12_59 = arith.constant 12 : index
    %c0_60 = arith.constant 0 : index
    %226 = vector.load %arg10[%c12_59, %c0_60] : memref<16x32xbf16, #tpu.memory_space<vmem>>, vector<2x32xbf16>
    tpu.vector_store %arg10[%c12_59, %c0_60], %225 {strides = array<i32>} : memref<16x32xbf16, #tpu.memory_space<vmem>>, vector<2x32xbf16>,
    %c14 = arith.constant 14 : index
    %c0_61 = arith.constant 0 : index
    %227 = vector.load %arg9[%c14, %c0_61] : memref<16x128xf32, #tpu.memory_space<vmem>>, vector<2x128xf32>
    %228 = arith.truncf %224 : vector<2x32xf32> to vector<2x32xbf16>
    %cst_62 = arith.constant dense<0.000000e+00> : vector<2x128xf32>
    %229 = tpu.matmul %228, %7, %cst_62 {dimension_numbers = #tpu.dot_dimension_numbers<[1], [0], [0], [1], [0, 0, 1, 1], [], []>} : vector<2x32xbf16>, vector<32x128xbf16>, vector<2x128xf32> -> vector<2x128xf32>
    %230 = arith.addf %227, %229 : vector<2x128xf32>
    %231 = vector.extract_strided_slice %230 {offsets = [0, 0], sizes = [2, 32], strides = [1, 1]} : vector<2x128xf32> to vector<2x32xf32>
    %232 = arith.negf %231 : vector<2x32xf32>
    %233 = math.exp %232 : vector<2x32xf32>
    %cst_63 = arith.constant 1.000000e+00 : f32
    %234 = vector.broadcast %cst_63 : f32 to vector<2x32xf32>
    %235 = arith.addf %234, %233 : vector<2x32xf32>
    %236 = arith.divf %234, %235 : vector<2x32xf32>
    %237 = vector.extract_strided_slice %230 {offsets = [0, 32], sizes = [2, 32], strides = [1, 1]} : vector<2x128xf32> to vector<2x32xf32>
    %238 = arith.negf %237 : vector<2x32xf32>
    %239 = math.exp %238 : vector<2x32xf32>
    %cst_64 = arith.constant 1.000000e+00 : f32
    %240 = vector.broadcast %cst_64 : f32 to vector<2x32xf32>
    %241 = arith.addf %240, %239 : vector<2x32xf32>
    %242 = arith.divf %240, %241 : vector<2x32xf32>
    %243 = vector.extract_strided_slice %230 {offsets = [0, 64], sizes = [2, 32], strides = [1, 1]} : vector<2x128xf32> to vector<2x32xf32>
    %244 = math.tanh %243 : vector<2x32xf32>
    %245 = vector.extract_strided_slice %230 {offsets = [0, 96], sizes = [2, 32], strides = [1, 1]} : vector<2x128xf32> to vector<2x32xf32>
    %246 = arith.negf %245 : vector<2x32xf32>
    %247 = math.exp %246 : vector<2x32xf32>
    %cst_65 = arith.constant 1.000000e+00 : f32
    %248 = vector.broadcast %cst_65 : f32 to vector<2x32xf32>
    %249 = arith.addf %248, %247 : vector<2x32xf32>
    %250 = arith.divf %248, %249 : vector<2x32xf32>
    %251 = arith.mulf %242, %222 : vector<2x32xf32>
    %252 = arith.mulf %236, %244 : vector<2x32xf32>
    %253 = arith.addf %251, %252 : vector<2x32xf32>
    %254 = math.tanh %253 : vector<2x32xf32>
    %255 = arith.mulf %250, %254 : vector<2x32xf32>
    %256 = arith.truncf %255 : vector<2x32xf32> to vector<2x32xbf16>
    %c14_66 = arith.constant 14 : index
    %c0_67 = arith.constant 0 : index
    %257 = vector.load %arg10[%c14_66, %c0_67] : memref<16x32xbf16, #tpu.memory_space<vmem>>, vector<2x32xbf16>
    tpu.vector_store %arg10[%c14_66, %c0_67], %256 {strides = array<i32>} : memref<16x32xbf16, #tpu.memory_space<vmem>>, vector<2x32xbf16>,
    %c0_68 = arith.constant 0 : index
    %c0_69 = arith.constant 0 : index
    %258 = vector.load %arg7[%c0_68, %c0_69] : memref<2x32xf32, #tpu.memory_space<vmem>>, vector<2x32xf32>
    tpu.vector_store %arg7[%c0_68, %c0_69], %255 {strides = array<i32>} : memref<2x32xf32, #tpu.memory_space<vmem>>, vector<2x32xf32>,
    %c0_70 = arith.constant 0 : index
    %c0_71 = arith.constant 0 : index
    %259 = vector.load %arg8[%c0_70, %c0_71] : memref<2x32xf32, #tpu.memory_space<vmem>>, vector<2x32xf32>
    tpu.vector_store %arg8[%c0_70, %c0_71], %253 {strides = array<i32>} : memref<2x32xf32, #tpu.memory_space<vmem>>, vector<2x32xf32>,
    %c0_72 = arith.constant 0 : index
    %c0_73 = arith.constant 0 : index
    %260 = vector.load %arg10[%c0_72, %c0_73] : memref<16x32xbf16, #tpu.memory_space<vmem>>, vector<16x32xbf16>
    %c0_74 = arith.constant 0 : index
    %c0_75 = arith.constant 0 : index
    %261 = vector.load %arg4[%c0_74, %c0_75] : memref<32x32xbf16, #tpu.memory_space<vmem>>, vector<32x32xbf16>
    %cst_76 = arith.constant dense<0.000000e+00> : vector<16x32xf32>
    %262 = tpu.matmul %260, %261, %cst_76 {dimension_numbers = #tpu.dot_dimension_numbers<[1], [0], [0], [1], [0, 0, 1, 1], [], []>} : vector<16x32xbf16>, vector<32x32xbf16>, vector<16x32xf32> -> vector<16x32xf32>
    %c0_77 = arith.constant 0 : index
    %c0_78 = arith.constant 0 : index
    %263 = vector.load %arg5[%c0_77, %c0_78] : memref<1x32xf32, #tpu.memory_space<vmem>>, vector<1x32xf32>
    %264 = vector.broadcast %263 : vector<1x32xf32> to vector<16x32xf32>
    %265 = arith.addf %262, %264 : vector<16x32xf32>
    %c0_79 = arith.constant 0 : index
    %c0_80 = arith.constant 0 : index
    %266 = vector.load %arg6[%c0_79, %c0_80] : memref<16x32xf32, #tpu.memory_space<vmem>>, vector<16x32xf32>
    tpu.vector_store %arg6[%c0_79, %c0_80], %265 {strides = array<i32>} : memref<16x32xf32, #tpu.memory_space<vmem>>, vector<16x32xf32>,
    return
  }
}

</mosaic_0001>

<bundles_post_ra>
// kernel: _oracle_forward_impl.1
= control target key start
LH: loop header
LB: loop body
LE: loop exit
PB: predicated region body
PF: predicated region fallthrough
CT: control target
= control target key end

     0   :  { %14 = vsyncpa [#allocation5], 0  ;;  %v1158_v1 = vmov 0.0   ;;  %vm1159_vm0 = vmmov 0   ;;  %vm59_vm1 = vcmask 261120   ;;  %s1385_s0 = inlined_call_operand.vmem [shape: bf16[16,32], index: 0, kind: input, shape index: {}]   ;;  %s1386_s1 = inlined_call_operand.vmem [shape: bf16[32,128], index: 1, kind: input, shape index: {}]   ;;  %s1387_s2 = inlined_call_operand.vmem [shape: bf16[32,128], index: 2, kind: input, shape index: {}]   ;;  %s1388_s3 = inlined_call_operand.vmem [shape: f32[1,128], index: 3, kind: input, shape index: {}]   ;;  %s1389_s4 = inlined_call_operand.vmem [shape: bf16[32,32], index: 4, kind: input, shape index: {}]   ;;  %s1390_s5 = inlined_call_operand.vmem [shape: f32[1,32], index: 5, kind: input, shape index: {}]   ;;  %s1391_s6 = inlined_call_operand.vmem [shape: f32[16,32], index: 6, kind: output, shape index: {0}]   ;;  %s1392_s7 = inlined_call_operand.hbm [shape: f32[2,32], index: 7, kind: output, shape index: {1}]   ;;  %s1393_s8 = inlined_call_operand.hbm [shape: f32[2,32], index: 8, kind: output, shape index: {2}]  }
   0x1   :  { %v1042_v0 = vld [vmem:[%s1386_s1 + $0x8] sm:$0xff]   ;;  %954 = vmatprep.subr.bf16.mxu0 %v1158_v1  ;;  %962 = vmatprep.subr.bf16.mxu1 %v1158_v1  ;;  %v1043_v2 = vld [vmem:[%s1386_s1] sm:$0xff]  }
   0x2   :  { %955 = vmatpush3.bf16.msra.mxu0 %v1042_v0  ;;  %v1222_v3 = vld [vmem:[%s1387_s2 + $0x8] sm:$0xff]   ;;  %958 = vmatprep.mubr.msk.bf16.mxu0 %vm1159_vm0, %v1158_v1  ;;  %v1233_v4 = vld [vmem:[%s1387_s2] sm:$0xff]  }
   0x3   :  { %956 = vmatprep.subr.bf16.mxu0 %v1158_v1  ;;  %966 = vmatprep.mubr.msk.bf16.mxu1 %vm1159_vm0, %v1158_v1  ;;  %v1045_v5 = vld [vmem:[%s1385_s0] sm:$0xff]  }
   0x4   :  { %963 = vmatpush3.bf16.msra.mxu1 %v1222_v3 }
   0x5   :  { %964 = vmatprep.subr.bf16.mxu1 %v1158_v1 }
   0x6   :  { %957 = vmatpush3.bf16.msra.mxu0 %v1043_v2 }
   0x7   :  { %15 = vsyncpa [#allocation7], 0  ;;  %970 = vmatprep.subr.bf16.mxu0 %v1158_v1  ;;  %v1160_v6 = vmov 0   ;;  %v881_v7 = vld [vmem:[%s1388_s3] ss:$0 sm:$0xff]  ;;  %s1161_s14 = smov 64  }
   0x8   :  { %965 = vmatpush3.bf16.msra.mxu1 %v1233_v4  ;;  %s1162_s3 = smov 32   ;;  %vm198_vm2 = vcmask 253952   ;;  %vm360_vm3 = vcmask 256002   ;;  %vm279_vm4 = vcmask 254977   ;;  %vm441_vm5 = vcmask 257027   ;;  %s1163_s19 = smov 96  }
   0x9   :  { %959 = vmatmul.mubr.msk.bf16.vlgmr.msra.gmra.mxu0 %vm59_vm1, %v1045_v5  ;;  %978 = vmatprep.subr.bf16.mxu1 %v1158_v1  ;;  %vm766_vm6 = vcmask 254976   ;;  %s1165_s21 = smov [#allocation6]  }
   0xa   :  { %971 = vmatpush3.bf16.msra.mxu0 %v1222_v3  ;;  %974 = vmatprep.mubr.msk.bf16.mxu0 %vm1159_vm0, %v1158_v1  ;;  %s867_s22 = sshll.u32 %s1165_s21, 4  ;;  %s868_s22 = int_to_ptr.vmem [resolvable:$true] %s867_s22 }
   0xb   :  { %967 = vmatmul.mubr.bf16.vlgmr.msra.gmra.mxu1 %v1160_v6  ;;  %972 = vmatprep.subr.bf16.mxu0 %v1158_v1 }
   0xc   :  { %979 = vmatpush3.bf16.msra.mxu1 %v1222_v3  ;;  %982 = vmatprep.mubr.msk.bf16.mxu1 %vm1159_vm0, %v1158_v1 }
   0xd   :  { %980 = vmatprep.subr.bf16.mxu1 %v1158_v1 }
   0xe   :  { %973 = vmatpush3.bf16.msra.mxu0 %v1233_v4 }
   0xf   :  { %986 = vmatprep.subr.bf16.mxu0 %v1158_v1 }
  0x10   :  { %981 = vmatpush3.bf16.msra.mxu1 %v1233_v4 }
  0x11   :  { %994 = vmatprep.subr.bf16.mxu1 %v1158_v1 }
  0xc9   :  { %v97_v8 = vpop.f32.mrf.mxu0 }
  0xca   :  { %v98_v9 = vadd.f32 %v881_v7, %v97_v8 }
  0xcb   :  { %v960_v10 = vpop.f32.mrf.mxu0  ;;  %v160_v11 = vpop.f32.mrf.mxu1 }
  0xcc   :  { %104 = vst [vmem:[#allocation2] sm:$0xff] %v98_v9 }
  0xcd   :  { %v100_v12 = vpop.f32.mrf.mxu0  ;;  %v968_v13 = vpop.f32.mrf.mxu1 }
  0xce   :  { %v101_v14 = vadd.f32 %v881_v7, %v100_v12 }
  0xcf   :  { %v961_v15 = vpop.f32.mrf.mxu0  ;;  %v163_v16 = vpop.f32.mrf.mxu1 }
  0xd0   :  { %105 = vst [vmem:[#allocation2 + $0x8] sm:$0xff] %v101_v14 }
  0xd1   :  { %v969_v17 = vpop.f32.mrf.mxu1 }
  0xd3   :  { %v110_v18 = vld [vmem:[#allocation2] sm:$0x3]  ;;  %v200_v35 = vld [vmem:[#allocation2 + $0x2] sm:$0x3]  ;;  %v281_v56 = vld [vmem:[#allocation2 + $0x4] sm:$0x3] }
  0xd4   :  { %v166_v19 = vadd.f32 %v160_v11, %v110_v18  ;;  %v362_v16 = vld [vmem:[#allocation2 + $0x6] sm:$0x3] }
  0xd6   :  { %1050 = vtanh.f32 %v166_v19  ;;  %v888_v21 = vmul.f32 -1.442695, %v166_v19 }
  0xd8   :  { %1052 = vpow2.f32 %v888_v21 }
  0xe3   :  { %v1051_v20 = vpop.eup %1050 }
  0xe4   :  { %176 = vrot.lane.b32.xlu0 %v1051_v20, %s1161_s14 }
  0xe5   :  { %v1053_v22 = vpop.eup %1052 }
  0xe6   :  { %v170_v23 = vadd.f32 1.0, %v1053_v22 }
  0xe8   :  { %1054 = vrcp.f32 %v170_v23 }
  0xf5   :  { %v1055_v24 = vpop.eup %1054 }
  0xf6   :  { %v174_v27 = vmul.f32 0.0, %v1055_v24 }
 0x156   :  { %v177_v25 = vpop.permute.xlu0 %176 }
 0x157   :  { %v179_v26 = vmul.f32 %v1055_v24, %v177_v25 }
 0x159   :  { %181 = vrot.lane.b32.xlu0 %v179_v26, %s1162_s3 }
 0x1cb   :  { %v182_v28 = vpop.permute.xlu0 %181 }
 0x1cc   :  { %v184_v29 = vadd.f32 %v182_v28, %v174_v27 }
 0x1ce   :  { %1056 = vtanh.f32 %v184_v29 }
 0x1db   :  { %v1057_v30 = vpop.eup %1056 }
 0x1dc   :  { %187 = vrot.lane.b32.xlu1 %v1057_v30, %s1161_s14 }
 0x24e   :  { %v188_v31 = vpop.permute.xlu1 %187 }
 0x24f   :  { %v190_v32 = vmul.f32 %v1055_v24, %v188_v31 }
 0x251   :  { %v1261_v33 = vpack.c.bf16 %v190_v32, %v190_v32 }
 0x253   :  { %201 = vrot.lane.b32.xlu1 %v1261_v33, %s1162_s3 }
 0x2c5   :  { %v202_v34 = vpop.permute.xlu1 %201 }
 0x2c6   :  { %975 = vmatmul.mubr.msk.bf16.vlgmr.msra.gmra.mxu0 %vm59_vm1, %v202_v34 }
 0x2c7   :  { %987 = vmatpush3.bf16.msra.mxu0 %v1222_v3  ;;  %990 = vmatprep.mubr.msk.bf16.mxu0 %vm1159_vm0, %v1158_v1 }
 0x2c8   :  { %988 = vmatprep.subr.bf16.mxu0 %v1158_v1 }
 0x2cb   :  { %989 = vmatpush3.bf16.msra.mxu0 %v1233_v4 }
 0x2cc   :  { %1002 = vmatprep.subr.bf16.mxu0 %v1158_v1 }
 0x386   :  { %v240_v36 = vpop.f32.mrf.mxu0 }
 0x387   :  { %v246_v37 = vadd.f32 %v240_v36, %v200_v35 }
 0x388   :  { %v976_v38 = vpop.f32.mrf.mxu0 }
 0x389   :  { %1058 = vtanh.f32 %v246_v37  ;;  %v891_v42 = vmul.f32 -1.442695, %v246_v37  ;;  %v443_v38 = vld [vmem:[#allocation2 + $0x8] sm:$0x3] }
 0x38a   :  { %v243_v39 = vpop.f32.mrf.mxu0 }
 0x38b   :  { %1060 = vpow2.f32 %v891_v42 }
 0x38c   :  { %v977_v40 = vpop.f32.mrf.mxu0 }
 0x396   :  { %v1059_v41 = vpop.eup %1058 }
 0x397   :  { %256 = vrot.lane.b32.xlu0 %v1059_v41, %s1161_s14 }
 0x398   :  { %v1061_v43 = vpop.eup %1060 }
 0x399   :  { %v250_v44 = vadd.f32 1.0, %v1061_v43 }
 0x39b   :  { %1062 = vrcp.f32 %v250_v44 }
 0x3a8   :  { %v1063_v45 = vpop.eup %1062 }
 0x3a9   :  { %v254_v48 = vmul.f32 %v1063_v45, %v184_v29 }
 0x409   :  { %v257_v46 = vpop.permute.xlu0 %256 }
 0x40a   :  { %v259_v47 = vmul.f32 %v1063_v45, %v257_v46 }
 0x40c   :  { %261 = vrot.lane.b32.xlu1 %v259_v47, %s1162_s3 }
 0x47e   :  { %v262_v49 = vpop.permute.xlu1 %261 }
 0x47f   :  { %v264_v50 = vadd.f32 %v262_v49, %v254_v48 }
 0x481   :  { %1064 = vtanh.f32 %v264_v50 }
 0x48e   :  { %v1065_v51 = vpop.eup %1064 }
 0x48f   :  { %267 = vrot.lane.b32.xlu0 %v1065_v51, %s1161_s14 }
 0x501   :  { %v268_v52 = vpop.permute.xlu0 %267 }
 0x502   :  { %v270_v53 = vmul.f32 %v1063_v45, %v268_v52 }
 0x504   :  { %v1275_v54 = vpack.c.bf16 %v270_v53, %v270_v53 }
 0x506   :  { %282 = vrot.lane.b32.xlu1 %v1275_v54, %s1162_s3 }
 0x578   :  { %v283_v55 = vpop.permute.xlu1 %282 }
 0x579   :  { %983 = vmatmul.mubr.msk.bf16.vlgmr.msra.gmra.mxu1 %vm59_vm1, %v283_v55 }
 0x57a   :  { %995 = vmatpush3.bf16.msra.mxu1 %v1222_v3  ;;  %998 = vmatprep.mubr.msk.bf16.mxu1 %vm1159_vm0, %v1158_v1 }
 0x57b   :  { %996 = vmatprep.subr.bf16.mxu1 %v1158_v1 }
 0x57e   :  { %997 = vmatpush3.bf16.msra.mxu1 %v1233_v4 }
 0x57f   :  { %1010 = vmatprep.subr.bf16.mxu1 %v1158_v1 }
 0x639   :  { %v321_v57 = vpop.f32.mrf.mxu1 }
 0x63a   :  { %v327_v58 = vadd.f32 %v321_v57, %v281_v56 }
 0x63b   :  { %v984_v59 = vpop.f32.mrf.mxu1 }
 0x63c   :  { %1066 = vtanh.f32 %v327_v58  ;;  %v894_v63 = vmul.f32 -1.442695, %v327_v58 }
 0x63d   :  { %v324_v60 = vpop.f32.mrf.mxu1 }
 0x63e   :  { %1068 = vpow2.f32 %v894_v63  ;;  %v522_v60 = vld [vmem:[#allocation2 + $0xa] sm:$0x3] }
 0x63f   :  { %v985_v61 = vpop.f32.mrf.mxu1 }
 0x649   :  { %v1067_v62 = vpop.eup %1066 }
 0x64a   :  { %337 = vrot.lane.b32.xlu0 %v1067_v62, %s1161_s14 }
 0x64b   :  { %v1069_v0 = vpop.eup %1068 }
 0x64c   :  { %v331_v2 = vadd.f32 1.0, %v1069_v0 }
 0x64e   :  { %1070 = vrcp.f32 %v331_v2 }
 0x65b   :  { %v1071_v5 = vpop.eup %1070 }
 0x65c   :  { %v335_v8 = vmul.f32 %v1071_v5, %v264_v50 }
 0x6bc   :  { %v338_v6 = vpop.permute.xlu0 %337 }
 0x6bd   :  { %v340_v7 = vmul.f32 %v1071_v5, %v338_v6 }
 0x6bf   :  { %342 = vrot.lane.b32.xlu1 %v340_v7, %s1162_s3 }
 0x731   :  { %v343_v9 = vpop.permute.xlu1 %342 }
 0x732   :  { %v345_v10 = vadd.f32 %v343_v9, %v335_v8 }
 0x734   :  { %1072 = vtanh.f32 %v345_v10 }
 0x741   :  { %v1073_v11 = vpop.eup %1072 }
 0x742   :  { %348 = vrot.lane.b32.xlu0 %v1073_v11, %s1161_s14 }
 0x7b4   :  { %v349_v12 = vpop.permute.xlu0 %348 }
 0x7b5   :  { %v351_v13 = vmul.f32 %v1071_v5, %v349_v12 }
 0x7b7   :  { %v1289_v14 = vpack.c.bf16 %v351_v13, %v351_v13 }
 0x7b9   :  { %363 = vrot.lane.b32.xlu1 %v1289_v14, %s1162_s3 }
 0x82b   :  { %v364_v15 = vpop.permute.xlu1 %363 }
 0x82c   :  { %991 = vmatmul.mubr.msk.bf16.vlgmr.msra.gmra.mxu0 %vm59_vm1, %v364_v15 }
 0x82d   :  { %1003 = vmatpush3.bf16.msra.mxu0 %v1222_v3  ;;  %1006 = vmatprep.mubr.msk.bf16.mxu0 %vm1159_vm0, %v1158_v1 }
 0x82e   :  { %1004 = vmatprep.subr.bf16.mxu0 %v1158_v1 }
 0x831   :  { %1005 = vmatpush3.bf16.msra.mxu0 %v1233_v4 }
 0x832   :  { %1018 = vmatprep.subr.bf16.mxu0 %v1158_v1 }
 0x8ec   :  { %v402_v17 = vpop.f32.mrf.mxu0 }
 0x8ed   :  { %v408_v18 = vadd.f32 %v402_v17, %v362_v16 }
 0x8ee   :  { %v992_v19 = vpop.f32.mrf.mxu0 }
 0x8ef   :  { %1074 = vtanh.f32 %v408_v18  ;;  %v897_v23 = vmul.f32 -1.442695, %v408_v18  ;;  %v602_v19 = vld [vmem:[#allocation2 + $0xc] sm:$0x3] }
 0x8f0   :  { %v405_v20 = vpop.f32.mrf.mxu0 }
 0x8f1   :  { %1076 = vpow2.f32 %v897_v23 }
 0x8f2   :  { %v993_v21 = vpop.f32.mrf.mxu0 }
 0x8fc   :  { %v1075_v22 = vpop.eup %1074 }
 0x8fd   :  { %418 = vrot.lane.b32.xlu0 %v1075_v22, %s1161_s14 }
 0x8fe   :  { %v1077_v24 = vpop.eup %1076 }
 0x8ff   :  { %v412_v25 = vadd.f32 1.0, %v1077_v24 }
 0x901   :  { %1078 = vrcp.f32 %v412_v25 }
 0x90e   :  { %v1079_v26 = vpop.eup %1078 }
 0x90f   :  { %v416_v29 = vmul.f32 %v1079_v26, %v345_v10 }
 0x96f   :  { %v419_v27 = vpop.permute.xlu0 %418 }
 0x970   :  { %v421_v28 = vmul.f32 %v1079_v26, %v419_v27 }
 0x972   :  { %423 = vrot.lane.b32.xlu1 %v421_v28, %s1162_s3 }
 0x9e4   :  { %v424_v30 = vpop.permute.xlu1 %423 }
 0x9e5   :  { %v426_v31 = vadd.f32 %v424_v30, %v416_v29 }
 0x9e7   :  { %1080 = vtanh.f32 %v426_v31 }
 0x9f4   :  { %v1081_v32 = vpop.eup %1080 }
 0x9f5   :  { %429 = vrot.lane.b32.xlu0 %v1081_v32, %s1161_s14 }
 0xa67   :  { %v430_v34 = vpop.permute.xlu0 %429 }
 0xa68   :  { %v432_v35 = vmul.f32 %v1079_v26, %v430_v34 }
 0xa6a   :  { %v1303_v36 = vpack.c.bf16 %v432_v35, %v432_v35 }
 0xa6c   :  { %444 = vrot.lane.b32.xlu1 %v1303_v36, %s1162_s3 }
 0xade   :  { %v445_v37 = vpop.permute.xlu1 %444 }
 0xadf   :  { %999 = vmatmul.mubr.msk.bf16.vlgmr.msra.gmra.mxu1 %vm59_vm1, %v445_v37 }
 0xae0   :  { %1011 = vmatpush3.bf16.msra.mxu1 %v1222_v3  ;;  %1014 = vmatprep.mubr.msk.bf16.mxu1 %vm1159_vm0, %v1158_v1 }
 0xae1   :  { %1012 = vmatprep.subr.bf16.mxu1 %v1158_v1 }
 0xae4   :  { %1013 = vmatpush3.bf16.msra.mxu1 %v1233_v4 }
 0xae5   :  { %1026 = vmatprep.subr.bf16.mxu1 %v1158_v1 }
 0xb9f   :  { %v483_v39 = vpop.f32.mrf.mxu1 }
 0xba0   :  { %v489_v40 = vadd.f32 %v483_v39, %v443_v38 }
 0xba1   :  { %v1000_v41 = vpop.f32.mrf.mxu1 }
 0xba2   :  { %1082 = vtanh.f32 %v489_v40  ;;  %v900_v45 = vmul.f32 -1.442695, %v489_v40 }
 0xba3   :  { %v486_v42 = vpop.f32.mrf.mxu1 }
 0xba4   :  { %1084 = vpow2.f32 %v900_v45  ;;  %v682_v42 = vld [vmem:[#allocation2 + $0xe] sm:$0x3] }
 0xba5   :  { %v1001_v43 = vpop.f32.mrf.mxu1 }
 0xbaf   :  { %v1083_v44 = vpop.eup %1082 }
 0xbb0   :  { %499 = vrot.lane.b32.xlu0 %v1083_v44, %s1161_s14 }
 0xbb1   :  { %v1085_v46 = vpop.eup %1084 }
 0xbb2   :  { %v493_v47 = vadd.f32 1.0, %v1085_v46 }
 0xbb4   :  { %1086 = vrcp.f32 %v493_v47 }
 0xbc1   :  { %v1087_v48 = vpop.eup %1086 }
 0xbc2   :  { %v497_v51 = vmul.f32 %v1087_v48, %v426_v31 }
 0xc22   :  { %v500_v49 = vpop.permute.xlu0 %499 }
 0xc23   :  { %v502_v50 = vmul.f32 %v1087_v48, %v500_v49 }
 0xc25   :  { %504 = vrot.lane.b32.xlu1 %v502_v50, %s1162_s3 }
 0xc97   :  { %v505_v52 = vpop.permute.xlu1 %504 }
 0xc98   :  { %v507_v53 = vadd.f32 %v505_v52, %v497_v51 }
 0xc9a   :  { %1088 = vtanh.f32 %v507_v53 }
 0xca7   :  { %v1089_v55 = vpop.eup %1088 }
 0xca8   :  { %510 = vrot.lane.b32.xlu0 %v1089_v55, %s1161_s14 }
 0xd1a   :  { %v511_v56 = vpop.permute.xlu0 %510 }
 0xd1b   :  { %v513_v57 = vmul.f32 %v1087_v48, %v511_v56  ;;  %v356_v56 = vrot.slane %v1289_v14, 6 }
 0xd1d   :  { %v1317_v58 = vpack.c.bf16 %v513_v57, %v513_v57 }
 0xd1f   :  { %523 = vrot.lane.b32.xlu1 %v1317_v58, %s1162_s3 }
 0xd91   :  { %v524_v59 = vpop.permute.xlu1 %523 }
 0xd92   :  { %1007 = vmatmul.mubr.msk.bf16.vlgmr.msra.gmra.mxu0 %vm59_vm1, %v524_v59 }
 0xd93   :  { %1019 = vmatpush3.bf16.msra.mxu0 %v1222_v3  ;;  %1022 = vmatprep.mubr.msk.bf16.mxu0 %vm1159_vm0, %v1158_v1 }
 0xd94   :  { %1020 = vmatprep.subr.bf16.mxu0 %v1158_v1 }
 0xd97   :  { %1021 = vmatpush3.bf16.msra.mxu0 %v1233_v4 }
 0xe52   :  { %v562_v61 = vpop.f32.mrf.mxu0 }
 0xe53   :  { %v568_v62 = vadd.f32 %v562_v61, %v522_v60 }
 0xe54   :  { %v1008_v63 = vpop.f32.mrf.mxu0 }
 0xe55   :  { %1090 = vtanh.f32 %v568_v62  ;;  %v903_v6 = vmul.f32 -1.442695, %v568_v62 }
 0xe56   :  { %v565_v0 = vpop.f32.mrf.mxu0 }
 0xe57   :  { %1092 = vpow2.f32 %v903_v6  ;;  %v1047_v6 = vld [vmem:[%s1389_s4 + $0x8] sm:$0xff]  }
 0xe58   :  { %v1009_v2 = vpop.f32.mrf.mxu0 }
 0xe59   :  { %v437_v2 = vrot.slane %v1303_v36, 5 }
 0xe62   :  { %v1091_v5 = vpop.eup %1090 }
 0xe63   :  { %578 = vrot.lane.b32.xlu0 %v1091_v5, %s1161_s14 }
 0xe64   :  { %v1093_v3 = vpop.eup %1092 }
 0xe65   :  { %v572_v7 = vadd.f32 1.0, %v1093_v3 }
 0xe67   :  { %1094 = vrcp.f32 %v572_v7 }
 0xe74   :  { %v1095_v8 = vpop.eup %1094 }
 0xe75   :  { %v576_v4 = vmul.f32 %v1095_v8, %v507_v53 }
 0xed5   :  { %v579_v9 = vpop.permute.xlu0 %578 }
 0xed6   :  { %v581_v10 = vmul.f32 %v1095_v8, %v579_v9 }
 0xed8   :  { %583 = vrot.lane.b32.xlu1 %v581_v10, %s1162_s3 }
 0xf4a   :  { %v584_v11 = vpop.permute.xlu1 %583 }
 0xf4b   :  { %v586_v12 = vadd.f32 %v584_v11, %v576_v4 }
 0xf4d   :  { %1096 = vtanh.f32 %v586_v12 }
 0xf5a   :  { %v1097_v13 = vpop.eup %1096 }
 0xf5b   :  { %589 = vrot.lane.b32.xlu0 %v1097_v13, %s1161_s14 }
 0xfcd   :  { %v590_v15 = vpop.permute.xlu0 %589 }
 0xfce   :  { %v592_v16 = vmul.f32 %v1095_v8, %v590_v15 }
 0xfd0   :  { %v1330_v17 = vpack.c.bf16 %v592_v16, %v592_v16 }
 0xfd2   :  { %603 = vrot.lane.b32.xlu1 %v1330_v17, %s1162_s3  ;;  %v597_v5 = vrot.slane %v1330_v17, 7 }
0x1044   :  { %v604_v18 = vpop.permute.xlu1 %603 }
0x1045   :  { %1015 = vmatmul.mubr.msk.bf16.vlgmr.msra.gmra.mxu1 %vm59_vm1, %v604_v18 }
0x1046   :  { %1030 = vmatprep.mubr.msk.bf16.mxu1 %vm1159_vm0, %v1158_v1  ;;  %1027 = vmatpush3.bf16.msra.mxu1 %v1047_v6 }
0x1047   :  { %1028 = vmatprep.subr.bf16.mxu1 %v1158_v1 }
0x1105   :  { %v642_v20 = vpop.f32.mrf.mxu1 }
0x1106   :  { %v648_v21 = vadd.f32 %v642_v20, %v602_v19 }
0x1107   :  { %v1016_v22 = vpop.f32.mrf.mxu1 }
0x1108   :  { %1098 = vtanh.f32 %v648_v21  ;;  %v906_v26 = vmul.f32 -1.442695, %v648_v21 }
0x1109   :  { %v645_v23 = vpop.f32.mrf.mxu1 }
0x110a   :  { %1100 = vpow2.f32 %v906_v26 }
0x110b   :  { %v1017_v24 = vpop.f32.mrf.mxu1 }
0x1115   :  { %v1099_v25 = vpop.eup %1098 }
0x1116   :  { %658 = vrot.lane.b32.xlu0 %v1099_v25, %s1161_s14 }
0x1117   :  { %v1101_v27 = vpop.eup %1100 }
0x1118   :  { %v652_v28 = vadd.f32 1.0, %v1101_v27 }
0x111a   :  { %1102 = vrcp.f32 %v652_v28 }
0x1127   :  { %v1103_v29 = vpop.eup %1102 }
0x1128   :  { %v656_v32 = vmul.f32 %v1103_v29, %v586_v12 }
0x1188   :  { %v659_v30 = vpop.permute.xlu0 %658 }
0x1189   :  { %v661_v31 = vmul.f32 %v1103_v29, %v659_v30 }
0x118b   :  { %663 = vrot.lane.b32.xlu1 %v661_v31, %s1162_s3 }
0x11fd   :  { %v664_v34 = vpop.permute.xlu1 %663 }
0x11fe   :  { %v666_v35 = vadd.f32 %v664_v34, %v656_v32 }
0x1200   :  { %1104 = vtanh.f32 %v666_v35 }
0x120d   :  { %v1105_v37 = vpop.eup %1104 }
0x120e   :  { %669 = vrot.lane.b32.xlu0 %v1105_v37, %s1161_s14 }
0x1280   :  { %v670_v38 = vpop.permute.xlu0 %669 }
0x1281   :  { %v672_v39 = vmul.f32 %v1103_v29, %v670_v38 }
0x1283   :  { %v673_v40 = vpack.c.bf16 %v672_v39, %v672_v39 }
0x1285   :  { %683 = vrot.lane.b32.xlu1 %v673_v40, %s1162_s3  ;;  %v677_v57 = vrot.slane %v673_v40, 6 }
0x12f7   :  { %v684_v41 = vpop.permute.xlu1 %683 }
0x12f8   :  { %1023 = vmatmul.mubr.msk.bf16.vlgmr.msra.gmra.mxu0 %vm59_vm1, %v684_v41 }
0x13b8   :  { %v722_v43 = vpop.f32.mrf.mxu0 }
0x13b9   :  { %v728_v44 = vadd.f32 %v722_v43, %v682_v42 }
0x13ba   :  { %v1024_v45 = vpop.f32.mrf.mxu0 }
0x13bb   :  { %1106 = vtanh.f32 %v728_v44  ;;  %v909_v49 = vmul.f32 -1.442695, %v728_v44 }
0x13bc   :  { %v725_v46 = vpop.f32.mrf.mxu0 }
0x13bd   :  { %1108 = vpow2.f32 %v909_v49 }
0x13be   :  { %v1025_v47 = vpop.f32.mrf.mxu0 }
0x13c8   :  { %v1107_v48 = vpop.eup %1106 }
0x13c9   :  { %738 = vrot.lane.b32.xlu0 %v1107_v48, %s1161_s14 }
0x13ca   :  { %v1109_v50 = vpop.eup %1108 }
0x13cb   :  { %v732_v51 = vadd.f32 1.0, %v1109_v50 }
0x13cd   :  { %1110 = vrcp.f32 %v732_v51 }
0x13da   :  { %v1111_v52 = vpop.eup %1110 }
0x13db   :  { %v736_v59 = vmul.f32 %v1111_v52, %v666_v35 }
0x143b   :  { %v739_v53 = vpop.permute.xlu0 %738 }
0x143c   :  { %v741_v55 = vmul.f32 %v1111_v52, %v739_v53 }
0x143e   :  { %743 = vrot.lane.b32.xlu1 %v741_v55, %s1162_s3 }
0x1442   :  { %195 = vrot.lane.b32.xlu1 %v1261_v33, %s1162_s3 }
0x1446   :  { %357 = vrot.lane.b32.xlu1 %v356_v56, %s1162_s3 }
0x144a   :  { %518 = vrot.lane.b32.xlu1 %v1317_v58, %s1162_s3  ;;  %v275_v58 = vrot.slane %v1275_v54, 7  ;;  %v1048_v54 = vld [vmem:[%s1389_s4] sm:$0xff]   ;;  %s1164_s4 = smov [#allocation4]  }
0x144b   :  { %1029 = vmatpush3.bf16.msra.mxu1 %v1048_v54  ;;  %s857_s20 = sshll.u32 %s1164_s4, 4  ;;  %s858_s20 = int_to_ptr.vmem [resolvable:$true] %s857_s20 }
0x144c   :  { %s1114_s23 = scalar_lea.vmem %s858_s20, 32  ;;  %p1119_p1 = scmp.lt.s32.totalorder %s858_s20, %s858_s20 }
0x144d   :  { %p1115_p0 = scmp.ne.s32.totalorder %s858_s20, %s1114_s23  ;;  %p1120_p2 = scmp.lt.s32.totalorder %s1114_s23, %s1114_s23 }
0x144e   :  { %678 = vrot.lane.b32.xlu1 %v677_v57, %s1162_s3 }
0x144f   :  { %p1121_p3 = por %p1120_p2, %p1119_p1 }
0x1451   :  { %p1122_p4 = pnand %p1121_p3, %p1115_p0 }
0x14b0   :  { %v744_v60 = vpop.permute.xlu1 %743 }
0x14b1   :  { %v746_v61 = vadd.f32 %v744_v60, %v736_v59 }
0x14b3   :  { %1112 = vtanh.f32 %v746_v61 }
0x14b4   :  { %v196_v62 = vpop.permute.xlu1 %195 }
0x14b5   :  { %199 = vst.msk [vmem:[#allocation3] sm:$0x1] %vm198_vm2, %v196_v62 }
0x14b8   :  { %v358_v63 = vpop.permute.xlu1 %357 }
0x14b9   :  { %361 = vst.msk [vmem:[#allocation3] sm:$0x4] %vm360_vm3, %v358_v63 }
0x14bc   :  { %v519_v33 = vpop.permute.xlu1 %518 }
0x14bd   :  { %521 = vst.msk [vmem:[#allocation3 + $0x4] sm:$0x1] %vm198_vm2, %v519_v33 }
0x14c0   :  { %v1113_v14 = vpop.eup %1112  ;;  %v679_v0 = vpop.permute.xlu1 %678 }
0x14c1   :  { %681 = vst.msk [vmem:[#allocation3 + $0x4] sm:$0x4] %vm360_vm3, %v679_v0  ;;  %749 = vrot.lane.b32.xlu0 %v1113_v14, %s1161_s14 }
0x14c5   :  { %276 = vrot.lane.b32.xlu0 %v275_v58, %s1162_s3 }
0x14c9   :  { %438 = vrot.lane.b32.xlu0 %v437_v2, %s1162_s3 }
0x14cd   :  { %598 = vrot.lane.b32.xlu0 %v597_v5, %s1162_s3 }
0x1533   :  { %v750_v3 = vpop.permute.xlu0 %749 }
0x1534   :  { %v752_v36 = vmul.f32 %v1111_v52, %v750_v3 }
0x1536   :  { %v923_v7 = vpack.c.bf16 %v752_v36, %v752_v36  ;;  %763 = vrot.lane.b32.xlu1 %v752_v36, %s1162_s3 }
0x1537   :  { %v277_v8 = vpop.permute.xlu0 %276 }
0x1538   :  { %v757_v9 = vrot.slane %v923_v7, 5  ;;  %280 = vst.msk [vmem:[#allocation3] sm:$0x2] %vm279_vm4, %v277_v8 }
0x153a   :  { %758 = vrot.lane.b32.xlu0 %v757_v9, %s1162_s3 }
0x153b   :  { %v439_v10 = vpop.permute.xlu0 %438 }
0x153c   :  { %442 = vst.msk [vmem:[#allocation3] sm:$0x8] %vm441_vm5, %v439_v10 }
0x153e   :  { %769 = vrot.lane.b32.xlu0 %v746_v61, %s1163_s19 }
0x153f   :  { %v599_v1 = vpop.permute.xlu0 %598 }
0x1540   :  { %601 = vst.msk [vmem:[#allocation3 + $0x4] sm:$0x2] %vm279_vm4, %v599_v1 }
0x15a8   :  { %v764_v4 = vpop.permute.xlu1 %763 }
0x15a9   :  { %767 = vst.msk [vmem:[#allocation4] sm:$0x3] %vm766_vm6, %v764_v4 }
0x15ac   :  { %v759_v11 = vpop.permute.xlu0 %758 }
0x15ad   :  { %761 = vst.msk [vmem:[#allocation3 + $0x4] sm:$0x8] %vm441_vm5, %v759_v11 }
0x15b0   :  { %v770_v12 = vpop.permute.xlu0 %769 }
0x15b1   :  { %772 = vst.msk [vmem:[#allocation6] sm:$0x3] %vm766_vm6, %v770_v12 }
0x15b4   :  { %v1049_v13 = vld [vmem:[#allocation3] sm:$0xff]  }
0x15b5   :  { %1031 = vmatmul.mubr.msk.bf16.vlgmr.msra.gmra.mxu1 %vm59_vm1, %v1049_v13 }
0x15b6   :  { %1125 = shalt.err (!%p1122_p4)
}
0x15b7   :  { %860 = dma.vmem_to_hbm [thread:$0]  %s858_s20, 32, %s1392_s7, [#allocation5]  }
0x15b8   :  { %s1134_s26 = scalar_lea.vmem %s868_s22, 32  ;;  %p1139_p6 = scmp.lt.s32.totalorder %s868_s22, %s868_s22 }
0x15b9   :  { %p1135_p5 = scmp.ne.s32.totalorder %s868_s22, %s1134_s26  ;;  %p1140_p7 = scmp.lt.s32.totalorder %s1134_s26, %s1134_s26 }
0x15bb   :  { %p1141_p8 = por %p1140_p7, %p1139_p6 }
0x15bd   :  { %p1142_p9 = pnand %p1141_p8, %p1135_p5 }
0x15bf   :  { %1145 = shalt.err (!%p1142_p9)
}
0x15c0   :  { %870 = dma.vmem_to_hbm [thread:$0]  %s868_s22, 32, %s1393_s8, [#allocation7]   ;;  %v911_v15 = vld [vmem:[%s1390_s5] ss:$0 sm:$0xff] }
0x1675   :  { %v840_v16 = vpop.f32.mrf.mxu1 }
0x1676   :  { %v841_v17 = vadd.f32 %v911_v15, %v840_v16 }
0x1677   :  { %v1032_v18 = vpop.f32.mrf.mxu1 }
0x1678   :  { %847 = vst.msk [vmem:[%s1391_s6] sm:$0xff] %vm59_vm1, %v841_v17 }
0x1679   :  { %v843_v19 = vpop.f32.mrf.mxu1 }
0x167a   :  { %v844_v20 = vadd.f32 %v911_v15, %v843_v19 }
0x167b   :  { %v1033_v21 = vpop.f32.mrf.mxu1 }
0x167c   :  { %848 = vst.msk [vmem:[%s1391_s6 + $0x8] sm:$0xff] %vm59_vm1, %v844_v20 }
0x167d   :  { %1154 = dma.done.wait [#allocation5], 32  }
0x167e   :  { %1155 = vsyncadd [#allocation5], 4294967264 }
0x167f   :  { %1156 = dma.done.wait [#allocation7], 32  }
0x1680   :  { %1157 = vsyncadd [#allocation7], 4294967264 }
0x1681   :  { %879 = vsyncpa [#allocation5], 1 }
0x1682   :  { %880 = vsyncpa [#allocation7], 1 }

</bundles_post_ra>
